<compile_context>
chip_gen: v7x
topology: tpu7x:2x2x1
jax: 0.10.0
libtpu: 0.0.40
codegen_flags: <defaults>
</compile_context>

<pallas_src>
import functools

import jax
import jax.numpy as jnp
from jax import lax
from jax.experimental import pallas as pl
from jax.experimental.pallas import tpu as pltpu


def _mgk_attn_kernel(q_ref, k_ref, v_ref, pi_ref, o_ref, *, d_head):
    """One (batch, q-tile) step.  Whole key axis handled in a single step.

    q_ref : (M, Da)   M = tq * n_head rows, (query, head)-ordered; Da = D + 2
    k_ref : (2K, Da)  fused augmented keys [key0 | key1], coeff folded in
    v_ref : (2K, D+1) [v | 1] duplicated for both key groups
    pi_ref: (M, 2K)   per-row [pi0 | pi1] mixture weights
    o_ref : (M, D)    unnormalized-then-normalized attention output slab
    """
    # c * ||q - k||^2 straight off the MXU (augmented-operand expansion).
    s = lax.dot_general(q_ref[...], k_ref[...], (((1,), (1,)), ((), ())),
                        preferred_element_type=jnp.float32)        # (M, 2K)
    # Exponent is analytically <= 0; clamp tiny positive rounding noise.
    p = pi_ref[...] * jnp.exp(jnp.minimum(s, 0.0))                  # (M, 2K)
    # One matmul gives both the value accumulation and (last column) the
    # denominator sum over keys.
    ov = jnp.dot(p, v_ref[...], preferred_element_type=jnp.float32)  # (M, D+1)
    den = ov[:, d_head:d_head + 1]                                   # (M, 1)
    o_ref[...] = (ov[:, :d_head] / (den + 1e-6)).astype(o_ref.dtype)


def _pick_tile(n, target, align):
    """Largest tile <= target that divides n (aligned); fall back to full n."""
    if n <= target:
        return n
    t = (target // align) * align
    while t >= align:
        if n % t == 0:
            return t
        t -= align
    return n


def mgk_attention_core(q_aug, k_aug, v_aug, pi_cat, *, n_head, d_head):
    """q_aug: (B, Q*H, D+2); k_aug: (B, 2K, D+2); v_aug: (B, 2K, D+1);
    pi_cat: (H, 2K)  ->  (B, Q*H, D) attention output (rows (query, head))."""
    bsz, mq, d_aug = q_aug.shape
    qlen = mq // n_head
    k2 = k_aug.shape[1]                       # 2 * klen (<= 512)
    dv = v_aug.shape[2]                       # d_head + 1

    # Key axis fits one step; pick tq so M = tq*n_head stays ~512 MXU rows.
    tq = _pick_tile(qlen, max(8, 512 // n_head), 8)
    nq = qlen // tq
    m = tq * n_head

    # Precompute the per-(row, key) mixture weights in XLA: row i*H + h of the
    # score block needs pi_cat[h], which is exactly jnp.tile over the tq dim.
    pi_bc = jnp.tile(pi_cat, (tq, 1)).astype(jnp.float32)           # (M, 2K)

    flops = 2 * bsz * nq * m * k2 * (d_aug + dv)
    cost = pl.CostEstimate(
        flops=int(flops),
        transcendentals=int(bsz * mq * k2),
        bytes_accessed=int(4 * (q_aug.size + k_aug.size + v_aug.size
                                + pi_bc.size + bsz * mq * d_head)))

    kernel = functools.partial(_mgk_attn_kernel, d_head=d_head)
    return pl.pallas_call(
        kernel,
        out_shape=jax.ShapeDtypeStruct((bsz, mq, d_head), jnp.float32),
        grid_spec=pltpu.PrefetchScalarGridSpec(
            num_scalar_prefetch=0,
            grid=(bsz, nq),
            in_specs=[
                # Augmented queries, (query, head)-ordered rows.
                pl.BlockSpec((None, m, d_aug), lambda b, qi: (b, qi, 0)),
                # Fused augmented keys (shared across heads): one DMA per step.
                pl.BlockSpec((None, k2, d_aug), lambda b, qi: (b, 0, 0)),
                # Values with ones column (denominator folded into the matmul).
                pl.BlockSpec((None, k2, dv), lambda b, qi: (b, 0, 0)),
                # Precomputed pi broadcast (same block every step).
                pl.BlockSpec((m, k2), lambda b, qi: (0, 0)),
            ],
            out_specs=pl.BlockSpec((None, m, d_head), lambda b, qi: (b, qi, 0)),
        ),
        compiler_params=pltpu.CompilerParams(
            dimension_semantics=("parallel", "parallel")),
        cost_estimate=cost,
    )(q_aug, k_aug, v_aug, pi_bc)


def layer_norm(x, gamma, beta, eps=1e-5):
    mu = jnp.mean(x, axis=-1, keepdims=True)
    var = jnp.mean(jnp.square(x - mu), axis=-1, keepdims=True)
    return (x - mu) * lax.rsqrt(var + eps) * gamma + beta


def mgk_multi_query_attn(h, params, *, n_head, d_head):
    """Forward pass of MGKMultiQueryAttn (rbf2keys, pre_lnorm=False, eval)."""
    qlen, bsz, d_model = h.shape
    scale = 1.0 / (d_head ** 0.5)
    c = h                                       # mems=None
    klen = c.shape[0]

    head_q = h @ params["w_q"]                  # (Q, B, H*D)
    kv = c @ params["w_kv"]                     # (K, B, 3*D)
    head_k, head_k1, head_v = jnp.split(kv, 3, axis=-1)

    # --- q side: [q, ||q||^2, 1], rows (query, head)-ordered per batch ------
    q4 = head_q.reshape(qlen, bsz, n_head, d_head)
    q_sq = jnp.sum(q4 * q4, axis=-1, keepdims=True)
    q_aug = jnp.concatenate([q4, q_sq, jnp.ones_like(q_sq)], axis=-1)
    q_aug = q_aug.transpose(1, 0, 2, 3).reshape(bsz, qlen * n_head, d_head + 2)

    # --- k side: fused [key0 | key1] with RBF coeff folded in ---------------
    # q_aug . k_aug_row == coeff * ||q - k||^2  (the RBF exponent).
    def aug_keys(kx, coeff):                    # kx: (K, B, D), coeff < 0
        ksq = jnp.sum(kx * kx, axis=-1, keepdims=True)
        return jnp.concatenate(
            [(-2.0 * coeff) * kx, jnp.full_like(ksq, coeff), coeff * ksq], -1)

    k_aug = jnp.concatenate([aug_keys(head_k, -0.5 * scale),      # key0
                             aug_keys(head_k1, -1.5 * scale)], 0)  # key1
    k_aug = k_aug.transpose(1, 0, 2)            # (B, 2K, D+2)

    # --- v side: ones column folds the denominator into the P@V matmul ------
    v1 = jnp.concatenate([head_v, jnp.ones_like(head_v[..., :1])], axis=-1)
    v_aug = jnp.concatenate([v1, v1], 0).transpose(1, 0, 2)   # (B, 2K, D+1)

    # pi buffers are (H,1,1,256); klen <= 256 by module construction.
    pi_cat = jnp.concatenate([params["pi0"][:, 0, 0, :klen],
                              params["pi1"][:, 0, 0, :klen]], axis=-1)  # (H,2K)

    attn = mgk_attention_core(q_aug, k_aug, v_aug, pi_cat,
                              n_head=n_head, d_head=d_head)   # (B, Q*H, D)
    attn_vec = attn.reshape(bsz, qlen, n_head * d_head)        # free view
    attn_out = attn_vec @ params["w_o"]                        # (B, Q, d_model)
    attn_out = attn_out.transpose(1, 0, 2)                     # (Q, B, d_model)
    # dropout / dropatt are no-ops in eval mode
    return layer_norm(h + attn_out, params["gamma"], params["beta"])


def mgk_multi_query_attn_reference(h, params, *, n_head, d_head):
    """Pure-JAX reference (mirrors the PyTorch math) for correctness check."""
    qlen, bsz, d_model = h.shape
    scale = 1.0 / (d_head ** 0.5)
    c = h
    klen = c.shape[0]

    head_q = (h @ params["w_q"]).reshape(qlen, bsz, n_head, d_head)
    kv = c @ params["w_kv"]
    head_k, head_k1, head_v = jnp.split(kv, 3, axis=-1)

    q = head_q.transpose(2, 1, 0, 3)                     # (H,B,Q,D)
    k = head_k.transpose(1, 0, 2)[None]                  # (1,B,K,D)
    k1 = head_k1.transpose(1, 0, 2)[None]                # (1,B,K,D)

    def cdist2(a, b):
        diff = a[:, :, :, None, :] - b[:, :, None, :, :]
        return jnp.sum(diff * diff, axis=-1)             # (H,B,Q,K)

    qk0 = -scale / 2.0 * cdist2(q, k)
    qk1 = -3.0 * scale / 2.0 * cdist2(q, k1)
    pi0 = params["pi0"][:, :, :, :klen]
    pi1 = params["pi1"][:, :, :, :klen]
    p = pi0 * jnp.exp(qk0) + pi1 * jnp.exp(qk1)          # (H,B,Q,K)
    p = p.transpose(2, 3, 1, 0)                          # (Q,K,B,H)
    p = p / (jnp.sum(p, axis=1, keepdims=True) + 1e-6)

    v = head_v                                           # (K,B,D)
    attn_vec = jnp.einsum("ijbn,jbd->ibnd", p, v)
    attn_vec = attn_vec.reshape(qlen, bsz, n_head * d_head)
    attn_out = attn_vec @ params["w_o"]
    return layer_norm(h + attn_out, params["gamma"], params["beta"])


if __name__ == "__main__":
    # Small shapes consistent with the module's forward: h = (seq, batch, d_model)
    n_head, d_head, d_model = 2, 16, 32
    qlen, bsz = 8, 2

    key = jax.random.PRNGKey(0)
    k_h, k_q, k_kv, k_o = jax.random.split(key, 4)

    h = jax.random.normal(k_h, (qlen, bsz, d_model), jnp.float32)

    params = {
        # PyTorch Linear(in,out,bias=False).weight is (out,in); we store (in,out)
        "w_q": 0.05 * jax.random.normal(k_q, (d_model, n_head * d_head), jnp.float32),
        "w_kv": 0.05 * jax.random.normal(k_kv, (d_model, 3 * d_head), jnp.float32),
        "w_o": 0.05 * jax.random.normal(k_o, (n_head * d_head, d_model), jnp.float32),
        "pi0": 0.5 * jnp.ones((n_head, 1, 1, 256), jnp.float32),
        "pi1": 0.5 * jnp.ones((n_head, 1, 1, 256), jnp.float32),
        "gamma": jnp.ones((d_model,), jnp.float32),
        "beta": jnp.zeros((d_model,), jnp.float32),
    }

    out = mgk_multi_query_attn(h, params, n_head=n_head, d_head=d_head)
    out = jax.block_until_ready(out)

    ref = mgk_multi_query_attn_reference(h, params, n_head=n_head, d_head=d_head)
    ref = jax.block_until_ready(ref)

    assert out.shape == (qlen, bsz, d_model)
    assert jnp.allclose(out, ref, atol=1e-4, rtol=1e-4), "mismatch vs reference"
    print("KERNEL_OK")
</pallas_src>

<mosaic_0001>
module attributes {stable_mosaic.version = 11 : i64} {
  func.func @_mgk_attn_kernel(%arg0: i32, %arg1: i32, %arg2: memref<1x16x18xf32, #tpu.memory_space<vmem>>, %arg3: memref<1x16x18xf32, #tpu.memory_space<vmem>>, %arg4: memref<1x16x17xf32, #tpu.memory_space<vmem>>, %arg5: memref<16x16xf32, #tpu.memory_space<vmem>>, %arg6: memref<1x16x16xf32, #tpu.memory_space<vmem>>) attributes {dimension_semantics = [#tpu.dimension_semantics<parallel>, #tpu.dimension_semantics<parallel>], iteration_bounds = array<i64: 2, 1>, scalar_prefetch = 0 : i64, scratch_operands = 0 : i64, tpu.core_type = #tpu.core_type<tc>, window_params = [{transform_indices = @transform_0, window_bounds = array<i64: 1, 16, 18>}, {transform_indices = @transform_1, window_bounds = array<i64: 1, 16, 18>}, {transform_indices = @transform_2, window_bounds = array<i64: 1, 16, 17>}, {pipeline_mode = #tpu.pipeline_mode<synchronous>, transform_indices = @transform_3, window_bounds = array<i64: 16, 16>}, {transform_indices = @transform_4, window_bounds = array<i64: 1, 16, 16>}]} {
    %c0 = arith.constant 0 : index
    %c0_0 = arith.constant 0 : index
    %c0_1 = arith.constant 0 : index
    %0 = vector.load %arg2[%c0, %c0_0, %c0_1] : memref<1x16x18xf32, #tpu.memory_space<vmem>>, vector<1x16x18xf32>
    %1 = vector.shape_cast %0 : vector<1x16x18xf32> to vector<16x18xf32>
    %c0_2 = arith.constant 0 : index
    %c0_3 = arith.constant 0 : index
    %c0_4 = arith.constant 0 : index
    %2 = vector.load %arg3[%c0_2, %c0_3, %c0_4] : memref<1x16x18xf32, #tpu.memory_space<vmem>>, vector<1x16x18xf32>
    %3 = vector.shape_cast %2 : vector<1x16x18xf32> to vector<16x18xf32>
    %cst = arith.constant dense<0.000000e+00> : vector<16x16xf32>
    %4 = tpu.matmul %1, %3, %cst {dimension_numbers = #tpu.dot_dimension_numbers<[1], [1], [0], [0], [0, 0, 1, 0], [], []>} : vector<16x18xf32>, vector<16x18xf32>, vector<16x16xf32> -> vector<16x16xf32>
    %c0_5 = arith.constant 0 : index
    %c0_6 = arith.constant 0 : index
    %5 = vector.load %arg5[%c0_5, %c0_6] : memref<16x16xf32, #tpu.memory_space<vmem>>, vector<16x16xf32>
    %cst_7 = arith.constant 0.000000e+00 : f32
    %6 = vector.broadcast %cst_7 : f32 to vector<16x16xf32>
    %7 = arith.minimumf %4, %6 : vector<16x16xf32>
    %8 = math.exp %7 : vector<16x16xf32>
    %9 = arith.mulf %5, %8 : vector<16x16xf32>
    %c0_8 = arith.constant 0 : index
    %c0_9 = arith.constant 0 : index
    %c0_10 = arith.constant 0 : index
    %10 = vector.load %arg4[%c0_8, %c0_9, %c0_10] : memref<1x16x17xf32, #tpu.memory_space<vmem>>, vector<1x16x17xf32>
    %11 = vector.shape_cast %10 : vector<1x16x17xf32> to vector<16x17xf32>
    %cst_11 = arith.constant dense<0.000000e+00> : vector<16x17xf32>
    %12 = tpu.matmul %9, %11, %cst_11 {dimension_numbers = #tpu.dot_dimension_numbers<[1], [0], [0], [1], [0, 0, 1, 1], [], []>} : vector<16x16xf32>, vector<16x17xf32>, vector<16x17xf32> -> vector<16x17xf32>
    %13 = vector.extract_strided_slice %12 {offsets = [0, 16], sizes = [16, 1], strides = [1, 1]} : vector<16x17xf32> to vector<16x1xf32>
    %14 = vector.extract_strided_slice %12 {offsets = [0, 0], sizes = [16, 16], strides = [1, 1]} : vector<16x17xf32> to vector<16x16xf32>
    %cst_12 = arith.constant 9.99999997E-7 : f32
    %15 = vector.broadcast %cst_12 : f32 to vector<16x1xf32>
    %16 = arith.addf %13, %15 : vector<16x1xf32>
    %17 = vector.broadcast %16 : vector<16x1xf32> to vector<16x16xf32>
    %18 = arith.divf %14, %17 : vector<16x16xf32>
    %c0_13 = arith.constant 0 : index
    %c0_14 = arith.constant 0 : index
    %c0_15 = arith.constant 0 : index
    %19 = vector.load %arg6[%c0_13, %c0_14, %c0_15] : memref<1x16x16xf32, #tpu.memory_space<vmem>>, vector<1x16x16xf32>
    %20 = vector.shape_cast %19 : vector<1x16x16xf32> to vector<16x16xf32>
    %21 = vector.shape_cast %18 : vector<16x16xf32> to vector<1x16x16xf32>
    tpu.vector_store %arg6[%c0_13, %c0_14, %c0_15], %21 {strides = array<i32>} : memref<1x16x16xf32, #tpu.memory_space<vmem>>, vector<1x16x16xf32>,
    return
  }
  func.func @transform_0(%arg0: i32, %arg1: i32) -> (i32, i32, i32) {
    %c0_i32 = arith.constant 0 : i32
    %c0_i32_0 = arith.constant 0 : i32
    return %arg0, %arg1, %c0_i32 : i32, i32, i32
  }
  func.func @transform_1(%arg0: i32, %arg1: i32) -> (i32, i32, i32) {
    %c0_i32 = arith.constant 0 : i32
    %c0_i32_0 = arith.constant 0 : i32
    %c0_i32_1 = arith.constant 0 : i32
    return %arg0, %c0_i32, %c0_i32_0 : i32, i32, i32
  }
  func.func @transform_2(%arg0: i32, %arg1: i32) -> (i32, i32, i32) {
    %c0_i32 = arith.constant 0 : i32
    %c0_i32_0 = arith.constant 0 : i32
    %c0_i32_1 = arith.constant 0 : i32
    return %arg0, %c0_i32, %c0_i32_0 : i32, i32, i32
  }
  func.func @transform_3(%arg0: i32, %arg1: i32) -> (i32, i32) {
    %c0_i32 = arith.constant 0 : i32
    %c0_i32_0 = arith.constant 0 : i32
    %c0_i32_1 = arith.constant 0 : i32
    return %c0_i32, %c0_i32_0 : i32, i32
  }
  func.func @transform_4(%arg0: i32, %arg1: i32) -> (i32, i32, i32) {
    %c0_i32 = arith.constant 0 : i32
    %c0_i32_0 = arith.constant 0 : i32
    return %arg0, %arg1, %c0_i32 : i32, i32, i32
  }
}

</mosaic_0001>

<bundles_post_ra>
// kernel: tpu_custom_call.1
= control target key start
LH: loop header
LB: loop body
LE: loop exit
PB: predicated region body
PF: predicated region fallthrough
CT: control target
= control target key end

     0   :  { %s1421_s0 = inlined_call_operand.hbm [shape: f32[2,16,18], index: 0, kind: input, shape index: {}]   ;;  %s1422_s1 = inlined_call_operand.hbm [shape: f32[2,16,18], index: 1, kind: input, shape index: {}]   ;;  %s1423_s2 = inlined_call_operand.hbm [shape: f32[2,16,17], index: 2, kind: input, shape index: {}]   ;;  %s1424_s3 = inlined_call_operand.hbm [shape: f32[16,16], index: 3, kind: input, shape index: {}]   ;;  %s1425_s4 = inlined_call_operand.hbm [shape: f32[2,16,16], index: 4, kind: output, shape index: {}]  }
   0x1   :  { %1443 = sst [smem:[#allocation19_spill]] %s1421_s0 }
   0x2   :  { %1444 = sst [smem:[#allocation20_spill]] %s1422_s1 }
   0x3   :  { %9 = vsyncpa [#allocation3], 0 }
   0x4   :  { %11 = vsyncpa [#allocation3 + $0x1], 0 }
   0x5   :  { %12 = vsyncpa [#allocation6], 0 }
   0x6   :  { %14 = vsyncpa [#allocation6 + $0x1], 0 }
   0x7   :  { %15 = vsyncpa [#allocation9], 0 }
   0x8   :  { %16 = vsyncpa [#allocation4], 0 }
   0x9   :  { %18 = vsyncpa [#allocation4 + $0x1], 0  ;;  %s1097_s15 = smov 0   ;;  %s1099_s16 = smov 0  }
   0xa   :  { %s1101_s17 = smov 0   ;;  %s1103_s18 = smov 0  }
   0xb   :  { %s1105_s19 = smov 0   ;;  %s1107_s20 = smov 0  }
   0xc LB: > { %1445 = sst [smem:[#allocation15_spill]] %s1048_s17  ;;  %s36_s21 = sadd.s32 1, %s1056_s19  ;;  %s1060_s20 = sphi %s1107_s20, %s24_s20   ;;  %s1056_s19 = sphi %s1105_s19, %s1475_s19   ;;  %s1052_s18 = sphi %s1103_s18, %s1474_s18   ;;  %s1048_s17 = sphi %s1101_s17, %s1473_s17   ;;  %s1044_s16 = sphi %s1099_s16, %s1477_s16   ;;  %s1040_s15 = sphi %s1097_s15, %s1476_s15  }
   0xd   : > { %1446 = sst [smem:[#allocation16_spill]] %s1056_s19  ;;  %s45_s22 = sadd.s32 1, %s1048_s17 }
   0xe   : > { %p38_p0 = scmp.ge.s32.totalorder %s36_s21, 2  ;;  %p1426_p1 = scmp.ne.s32.totalorder %s1048_s17, %s1044_s16 }
   0xf   : > { %p53_p2 = scmp.eq.s32.totalorder %s1060_s20, 0  ;;  %p786_p6 = scmp.lt.s32.totalorder %s1060_s20, 2 }
  0x10   : > { %s1479_s21 = smov (%p38_p0, %s36_s21), 0  ;;  %s1431_s24 = sand.u32 1, %s1048_s17  }
  0x11   : > { %1447 = sst [smem:[#allocation17_spill]] %s1479_s21  ;;  %p54_p3 = por %p53_p2, %p1426_p1 }
  0x12   : > { %s40_s23 = ssub.s32 %s1056_s19, %s1479_s21  ;;  %s1143_s25 = sshll.u32 %s1056_s19, 8 }
  0x13   : > { %p43_p5 = scmp.eq.s32.totalorder %s40_s23, 0  ;;  %s1150_s27 = sshll.u32 %s1431_s24, 4 }
  0x14   : > { %p1152_p7 = pnand %p786_p6, %p54_p3  ;;  %s219_s29 = sand.u32 1, %s1060_s20  }
  0x15   : > { %s1146_s26 = scalar_select %p43_p5, %s1048_s17, %s45_s22  }
  0x16   : > { %s1449_s28 = scalar_select %p1152_p7, 1, 0 }
  0x17   : > { %1448 = sst [smem:[#allocation18_spill]] %s1146_s26  ;;  %s1450_s1 = sld [smem:[#allocation20_spill]] }
  0x18   : > { %s223_s7 = scalar_lea.vmem [#allocation5], %s1150_s27  ;;  %s1166_s9 = scalar_lea.sflag [#allocation6], %s219_s29 }
  0x19   : > { %s230_s8 = sshll.u32 %s223_s7, 4  ;;  %p1172_p9 = pneg %p1152_p7  ;;  %s1164_s8 = int_to_ptr.vmem [resolvable:$true] %s230_s8 }
  0x1b   : > { %s1451_s11 = scalar_select %p1172_p9, 1, 0 }
  0x1d   : > { %s1161_s6 = scalar_lea.hbm %s1450_s1, %s1143_s25  ;;  %s857_s14 = scalar_lea.hbm %s1450_s1, 512 }
  0x1e   : > { %s852_s10 = scalar_lea.hbm %s1161_s6, 256  ;;  %p858_p12 = scmp.lt.u32.totalorder %s1161_s6, %s1450_s1 }
  0x1f   : > { %p853_p8 = scmp.ne.s32.totalorder %s1161_s6, %s852_s10  ;;  %p859_p13 = scmp.lt.u32.totalorder %s857_s14, %s852_s10 }
  0x20   : > { %p861_p2 = scmp.lt.u32.totalorder %s852_s10, %s1161_s6 }
  0x21   : > { %p855_p10 = pnand %p1172_p9, %p853_p8  ;;  %p860_p0 = por %p859_p13, %p858_p12 }
  0x23   : > { %p856_p11 = pneg %p855_p10  ;;  %p862_p3 = por %p861_p2, %p860_p0 }
  0x25   : > { %p863_p5 = pnand %p862_p3, %p856_p11 }
  0x27   : > { %866 = shalt.err (!%p863_p5)
}
  0x28   : > { %s867_s29 = scalar_lea.vmem %s1164_s8, 256  ;;  %s1062_s30 = smov [#allocation5]  }
  0x29   : > { %p868_p6 = scmp.ne.s32.totalorder %s1164_s8, %s867_s29  ;;  %s872_s5 = sshll.u32 %s1062_s30, 4  ;;  %s873_s5 = int_to_ptr.vmem [resolvable:$false] %s872_s5 }
  0x2a   : > { %s874_s7 = scalar_lea.vmem %s873_s5, 512  ;;  %p875_p4 = scmp.lt.s32.totalorder %s1164_s8, %s873_s5 }
  0x2b   : > { %p870_p8 = pnand %p868_p6, %p1172_p9  ;;  %p876_p1 = scmp.lt.s32.totalorder %s874_s7, %s867_s29 }
  0x2d   : > { %p871_p10 = pneg %p870_p8  ;;  %p877_p12 = por %p876_p1, %p875_p4 }
  0x2f   : > { %p878_p13 = pnand %p877_p12, %p871_p10 }
  0x31   : > { %881 = shalt.err (!%p878_p13)
}
  0x32   : > { %s1427_s10 = smov 128   ;;  %s1429_s12 = smov 8  }
  0x33   : > { %777 = dma.hbm_to_vmem [thread:$0]  (!%p1152_p7), %s1161_s6, 256, %s1164_s8, %s1166_s9, %s1427_s10, %s1427_s10, %s1429_s12  }
  0x34   : > { %s1200_s13 = sadd.s32 4294967295, %s1060_s20   ;;  %s689_s14 = sadd.s32 4294967294, %s1060_s20  }
  0x35   : > { %p58_p1 = scmp.ne.s32.totalorder %s1044_s16, %s1040_s15  ;;  %p1434_p4 = scmp.eq.s32.totalorder %s1200_s13, 0 }
  0x36   : > { %p157_p11 = scmp.eq.s32.totalorder %s1200_s13, 1  ;;  %p163_p0 = scmp.eq.s32.totalorder %s689_s14, 1 }
  0x37   : > { %p690_p2 = scmp.ge.s32.totalorder %s1060_s20, 1  ;;  %p1210_p3 = por %p1434_p4, %p58_p1 }
  0x38   : > { %p1453_p5 = scmp.ne.s32.totalorder %s1048_s17, %s1044_s16  ;;  %p1221_p8 = por %p163_p0, %p58_p1 }
  0x39   : > { %s1452_s22 = scalar_select %p1210_p3, 1, 0 }
  0x3a   : > { %p1217_p6 = por %p157_p11, %p1453_p5  ;;  %p170_p10 = scmp.lt.s32.totalorder %s1060_s20, 3 }
  0x3b   : > { %s1455_s8 = scalar_select %p1221_p8, 1, 0 }
  0x3c   : > { %s1454_s6 = scalar_select %p1217_p6, 1, 0 }
  0x3d   : > { %p1226_p12 = pnand %p690_p2, %p170_p10  ;;  %s1065_s29 = smov [#allocation8]  }
  0x3e   : > { %s182_s30 = sshll.u32 %s1065_s29, 4  ;;  %s1457_s0 = sld [smem:[#allocation19_spill]]  ;;  %s1230_s30 = int_to_ptr.vmem [resolvable:$true] %s182_s30 }
  0x3f   : > { %s1456_s23 = scalar_select %p1226_p12, 1, 0 }
  0x40   : > { %p767_p13 = pneg %p1226_p12  ;;  %s200_s10 = scalar_lea.vmem [#allocation2], %s1150_s27 }
  0x41   : > { %s209_s12 = sshll.u32 %s200_s10, 4  ;;  %s1459_s29 = sand.u32 1, %s1048_s17   ;;  %s1247_s12 = int_to_ptr.vmem [resolvable:$true] %s209_s12 }
  0x42   : > { %p1243_p1 = pnand %p767_p13, %p1434_p4  ;;  %s1251_s1 = scalar_lea.sflag [#allocation3], %s1459_s29 }
  0x44   : > { %s1238_s14 = scalar_lea.hbm %s1457_s0, %s1143_s25  ;;  %s887_s19 = scalar_lea.hbm %s1457_s0, 512 }
  0x45   : > { %s1458_s24 = scalar_select %p1243_p1, 1, 0 }
  0x46   : > { %s882_s21 = scalar_lea.hbm %s1238_s14, 256  ;;  %p888_p5 = scmp.lt.u32.totalorder %s1238_s14, %s1457_s0 }
  0x47   : > { %p883_p11 = scmp.ne.s32.totalorder %s1238_s14, %s882_s21  ;;  %p889_p10 = scmp.lt.u32.totalorder %s887_s19, %s882_s21 }
  0x48   : > { %p891_p4 = scmp.lt.u32.totalorder %s882_s21, %s1238_s14 }
  0x49   : > { %p885_p0 = pnand %p883_p11, %p1172_p9  ;;  %p890_p13 = por %p889_p10, %p888_p5 }
  0x4b   : > { %p886_p2 = pneg %p885_p0  ;;  %p892_p8 = por %p891_p4, %p890_p13 }
  0x4d   : > { %p893_p6 = pnand %p892_p8, %p886_p2 }
  0x4f   : > { %896 = shalt.err (!%p893_p6)
}
  0x50   : > { %s897_s29 = scalar_lea.vmem %s1247_s12, 256  ;;  %s1066_s5 = smov [#allocation2]  }
  0x51   : > { %p898_p11 = scmp.ne.s32.totalorder %s1247_s12, %s897_s29  ;;  %s902_s7 = sshll.u32 %s1066_s5, 4  ;;  %s903_s7 = int_to_ptr.vmem [resolvable:$false] %s902_s7 }
  0x52   : > { %s904_s26 = scalar_lea.vmem %s903_s7, 512  ;;  %p905_p12 = scmp.lt.s32.totalorder %s1247_s12, %s903_s7 }
  0x53   : > { %p900_p0 = pnand %p898_p11, %p1172_p9  ;;  %p906_p1 = scmp.lt.s32.totalorder %s904_s26, %s897_s29 }
  0x55   : > { %p901_p3 = pneg %p900_p0  ;;  %p907_p5 = por %p906_p1, %p905_p12 }
  0x57   : > { %p908_p10 = pnand %p907_p5, %p901_p3 }
  0x59   : > { %911 = shalt.err (!%p908_p10)
}
  0x5a   : > { %s1460_s19 = smov 8   ;;  %s1461_s21 = smov 128  }
  0x5b   : > { %774 = dma.hbm_to_vmem [thread:$0]  (!%p1152_p7), %s1238_s14, 256, %s1247_s12, %s1251_s1, %s1461_s21, %s1461_s21, %s1460_s19  }
  0x5c   : > { %s912_s5 = scalar_lea.hbm %s1424_s3, 256  ;;  %p1462_p3 = scmp.ne.s32.totalorder %s1458_s24, 0 }
  0x5d   : > { %p913_p4 = scmp.ne.s32.totalorder %s1424_s3, %s912_s5  ;;  %p919_p1 = scmp.lt.u32.totalorder %s912_s5, %s1424_s3 }
  0x5e   : > { %p914_p6 = pneg %p1462_p3 }
  0x60   : > { %p915_p8 = pnand %p914_p6, %p913_p4 }
  0x62   : > { %p916_p12 = pneg %p915_p8 }
  0x64   : > { %p921_p2 = pnand %p919_p1, %p916_p12 }
  0x66   : > { %924 = shalt.err (!%p921_p2)
}
  0x67   : > { %s925_s1 = scalar_lea.vmem %s1230_s30, 256  ;;  %p933_p5 = scmp.lt.s32.totalorder %s1230_s30, %s1230_s30 }
  0x68   : > { %p926_p13 = scmp.ne.s32.totalorder %s1230_s30, %s925_s1  ;;  %p934_p10 = scmp.lt.s32.totalorder %s925_s1, %s925_s1 }
  0x6a   : > { %p928_p11 = pnand %p926_p13, %p914_p6  ;;  %p935_p7 = por %p934_p10, %p933_p5 }
  0x6c   : > { %p929_p0 = pneg %p928_p11 }
  0x6e   : > { %p936_p9 = pnand %p935_p7, %p929_p0 }
  0x70   : > { %939 = shalt.err (!%p936_p9)
}
  0x71   : > { %770 = dma.hbm_to_vmem [thread:$0]  (!%p1462_p3), %s1424_s3, 256, %s1230_s30, [#allocation9], %s1461_s21, %s1461_s21, %s1460_s19  }
  0x72   : > { %s1306_s10 = scalar_lea.hbm %s1423_s2, %s1143_s25  ;;  %s244_s24 = scalar_lea.vmem [#allocation7], %s1150_s27 }
  0x73   : > { %s251_s5 = sshll.u32 %s244_s24, 4  ;;  %s940_s7 = scalar_lea.hbm %s1306_s10, 256  ;;  %s1309_s5 = int_to_ptr.vmem [resolvable:$true] %s251_s5 }
  0x74   : > { %p941_p7 = scmp.ne.s32.totalorder %s1306_s10, %s940_s7  ;;  %p1463_p9 = scmp.ne.s32.totalorder %s1451_s11, 0 }
  0x75   : > { %s945_s26 = scalar_lea.hbm %s1423_s2, 512  ;;  %p946_p3 = scmp.lt.u32.totalorder %s1306_s10, %s1423_s2 }
  0x76   : > { %p943_p4 = pnand %p941_p7, %p1463_p9  ;;  %p947_p8 = scmp.lt.u32.totalorder %s945_s26, %s940_s7 }
  0x77   : > { %p949_p1 = scmp.lt.u32.totalorder %s940_s7, %s1306_s10 }
  0x78   : > { %p944_p6 = pneg %p943_p4  ;;  %p948_p12 = por %p947_p8, %p946_p3 }
  0x7a   : > { %p950_p2 = por %p949_p1, %p948_p12 }
  0x7c   : > { %p951_p13 = pnand %p950_p2, %p944_p6 }
  0x7e   : > { %954 = shalt.err (!%p951_p13)
}
  0x7f   : > { %s955_s27 = scalar_lea.vmem %s1309_s5, 256  ;;  %s1067_s0 = smov [#allocation7]  }
  0x80   : > { %p956_p11 = scmp.ne.s32.totalorder %s1309_s5, %s955_s27  ;;  %s960_s17 = sshll.u32 %s1067_s0, 4  ;;  %s961_s17 = int_to_ptr.vmem [resolvable:$false] %s960_s17 }
  0x81   : > { %s962_s12 = scalar_lea.vmem %s961_s17, 512  ;;  %p963_p10 = scmp.lt.s32.totalorder %s1309_s5, %s961_s17 }
  0x82   : > { %p958_p0 = pnand %p956_p11, %p1463_p9  ;;  %p964_p7 = scmp.lt.s32.totalorder %s962_s12, %s955_s27 }
  0x84   : > { %p959_p5 = pneg %p958_p0  ;;  %p965_p4 = por %p964_p7, %p963_p10 }
  0x86   : > { %p966_p3 = pnand %p965_p4, %p959_p5 }
  0x88   : > { %969 = shalt.err (!%p966_p3)
}
  0x89   : > { %p1464_p6 = scmp.ne.s32.totalorder %s1449_s28, 0  ;;  %p1465_p9 = scmp.ne.s32.totalorder %s1456_s23, 0 }
  0x8a   : > { %s1339_s11 = sand.u32 (!%p1465_p9), 1, %s1044_s16   ;;  %p1466_p8 = scmp.ne.s32.totalorder (!%p1465_p9), %s1452_s22, 0 }
  0x8b   : > { %780 = dma.hbm_to_vmem [thread:$0]  (!%p1464_p6), %s1306_s10, 256, %s1309_s5, %s1166_s9, %s1461_s21, %s1461_s21, %s1460_s19  }
  0x8c   : > { %263 = sbr.rel (%p1465_p9) target bundleno = 771 (0x303), region = 36  ;;  %s1342_s14 = sshll.u32 (!%p1465_p9), %s1339_s11, 4 }
  0x8d   : > { %s266_s28 = scalar_lea.sflag (!%p1465_p9), [#allocation3], %s1339_s11  ;;  %s269_s24 = scalar_lea.vmem (!%p1465_p9), [#allocation2], %s1342_s14 }
  0x93   : > { %1023 = dma.done.wait (%p1466_p8), %s266_s28, 256  }
  0x94   : > { %1025 = vsyncadd (%p1466_p8), %s266_s28, 4294967040  ;;  %s274_s9 = sand.u32 1, %s1200_s13   ;;  %s278_s19 = scalar_lea.vmem [#allocation5], %s1342_s14 }
  0x95   : > { %s275_s23 = scalar_lea.sflag [#allocation6], %s274_s9 }
  0x96   : > { %1027 = dma.done.wait (%p1466_p8), %s275_s23, 512  }
  0x97   : > { %1029 = vsyncadd (%p1466_p8), %s275_s23, 4294966784  ;;  %s287_s21 = scalar_lea.vmem [#allocation7], %s1342_s14  ;;  %p1467_p12 = scmp.eq.s32.totalorder %s1200_s13, 0 }
  0x99   : > { %1031 = dma.done.wait (%p1467_p12), [#allocation9], 256   ;;  %p1468_p1 = pmov %p1467_p12 }
  0x9a   : > { %vm332_vm0 = vcmask 146432   ;;  %v330_v0 = vld [vmem:[%s278_s19] sm:$0xff]  ;;  %v331_v1 = vld [vmem:[%s278_s19 + $0x8] sm:$0xff]  ;;  %vm432_vm2 = vcmask 130048   ;;  %v1068_v20 = vmov 16   ;;  %s722_s13 = sshll.u32 %s1052_s18, 8 }
  0x9b   : > { %1033 = vsyncadd (%p1468_p1), [#allocation9], 4294967040  ;;  %v328_v2 = vld [vmem:[%s269_s24] sm:$0xff]  ;;  %v745_v3 = vpack.c.bf16 %v331_v1, %v330_v0  ;;  %v329_v4 = vld [vmem:[%s269_s24 + $0x8] sm:$0xff]  ;;  %843 = vset.pattern.permute.xlu0 %v1068_v20  ;;  %s325_s22 = scalar_lea.vmem [#allocation10], %s1342_s14  ;;  %s1369_s29 = scalar_lea.hbm %s1425_s4, %s722_s13 }
  0x9c   : > { %vm746_vm1 = vmpackc.low %vm332_vm0, %vm332_vm0  ;;  %735 = vmatprep.mubr.msk.f32.mxu0 %vm332_vm0, %v328_v2  ;;  %v430_v5 = vld [vmem:[%s287_s21] sm:$0xff]  ;;  %v431_v6 = vld [vmem:[%s287_s21 + $0x8] sm:$0xff]  ;;  %s548_s10 = sshll.u32 %s325_s22, 4  ;;  %s533_s30 = scalar_lea.sflag [#allocation4], %s1339_s11  ;;  %s1371_s10 = int_to_ptr.vmem [resolvable:$true] %s548_s10 }
  0x9d   : > { %747 = vmatprep.subr.msk.bf16.mxu0 %vm746_vm1, %v745_v3  ;;  %v751_v7 = vpack.c.bf16 %v431_v6, %v430_v5  ;;  %v420_v14 = vld [vmem:[#allocation8] sm:$0xff]  ;;  %v421_v16 = vld [vmem:[#allocation8 + $0x8] sm:$0xff]  ;;  %s970_s18 = scalar_lea.vmem %s1371_s10, 256  ;;  %p1469_p13 = scmp.ne.s32.totalorder %s1454_s6, 0 }
  0x9e   : > { %750 = vmatpush3.bf16.xpose.msk.msra.mxu0 %vm746_vm1, %v745_v3  ;;  %p971_p2 = scmp.ne.s32.totalorder %s1371_s10, %s970_s18  ;;  %s1069_s26 = smov [#allocation10]  }
  0x9f   : > { %752 = vmatprep.subr.bf16.mxu1 %v751_v7  ;;  %s974_s1 = sshll.u32 %s1069_s26, 4  ;;  %s975_s1 = int_to_ptr.vmem [resolvable:$false] %s974_s1 }
  0xa0   : > { %754 = vmatpush3.bf16.msra.mxu1 %v751_v7  ;;  %p972_p11 = pnand %p971_p2, %p1469_p13  ;;  %s976_s25 = scalar_lea.vmem %s975_s1, 512 }
  0xa1   : > { %p977_p5 = scmp.lt.s32.totalorder %s1371_s10, %s975_s1  ;;  %p978_p10 = scmp.lt.s32.totalorder %s976_s25, %s970_s18 }
  0xa2   : > { %p973_p0 = pneg %p972_p11 }
  0xa3   : > { %p979_p7 = por %p978_p10, %p977_p5 }
  0xa5   : > { %736 = vmatmul.mubr.msk.f32.vlgmr.msra.gmra.mrb[0].mxu0 %vm332_vm0, %v329_v4  ;;  %p980_p4 = pnand %p979_p7, %p973_p0 }
 0x178   : > { %v737_v8 = vpop.f32.mrb[0].mxu0 }
 0x179   : > { %v423_v9 = vmin.f32 %v737_v8, 0.0  ;;  %v411_v10 = vpop.f32.mrb[1].mxu0 }
 0x17a   : > { %v422_v11 = vmin.f32 %v411_v10, 0.0 }
 0x17b   : > { %v426_v12 = vmul.f32 1.442695, %v423_v9 }
 0x17c   : > { %v424_v13 = vmul.f32 1.442695, %v422_v11 }
 0x17d   : > { %844 = vpow2.f32 %v426_v12 }
 0x17e   : > { %846 = vpow2.f32 %v424_v13 }
 0x187   : > { %v845_v15 = vpop.eup %844 }
 0x188   : > { %v847_v17 = vpop.eup %846  ;;  %v429_v19 = vmul.f32 %v845_v15, %v421_v16 }
 0x189   : > { %v428_v18 = vmul.f32 %v847_v17, %v420_v14 }
 0x18b   : > { %742 = vmatprep.mubr.msk.f32.mxu1 %vm432_vm2, %v428_v18 }
 0x18c   : > { %743 = vmatmul.mubr.msk.f32.vlgmr.msra.gmra.mrb[0].mxu1 %vm432_vm2, %v429_v19 }
 0x25f   : > { %v744_v21 = vpop.f32.mrb[0].mxu1 }
 0x260   : > { %v505_v22 = vpop.f32.mrb[1].mxu1  ;;  %v515_v24 = vadd.f32 1e-06, %v744_v21 }
 0x261   : > { %v514_v23 = vadd.f32 1e-06, %v505_v22 }
 0x263   : > { %518 = vperm.xlu0 %843, %v514_v23  }
 0x267   : > { %523 = vperm.xlu0 %843, %v515_v24  }
 0x2e2   : > { %v519_v25 = vpop.permute.xlu0 %518 }
 0x2e3   : > { %848 = vrcp.f32 %v519_v25 }
 0x2e6   : > { %v524_v26 = vpop.permute.xlu0 %523 }
 0x2e7   : > { %850 = vrcp.f32 %v524_v26 }
 0x2ed   : > { %v849_v27 = vpop.eup %848 }
 0x2ee   : > { %v527_v28 = vmul.f32 %v849_v27, %v505_v22 }
 0x2f0   : > { %530 = vst.msk [vmem:[%s325_s22] sm:$0xff] %vm432_vm2, %v527_v28 }
 0x2f1   : > { %v851_v29 = vpop.eup %850 }
 0x2f2   : > { %v529_v30 = vmul.f32 %v851_v29, %v744_v21 }
 0x2f4   : > { %531 = vst.msk [vmem:[%s325_s22 + $0x8] sm:$0xff] %vm432_vm2, %v529_v30 }
 0x2f5   : > { %983 = shalt.err (!%p980_p4)
}
 0x2f6   : > { %s984_s27 = scalar_lea.hbm %s1369_s29, 256  ;;  %s988_s12 = scalar_lea.hbm %s1425_s4, 512 }
 0x2f7   : > { %p985_p3 = scmp.ne.s32.totalorder %s1369_s29, %s984_s27  ;;  %p989_p8 = scmp.lt.u32.totalorder %s1369_s29, %s1425_s4 }
 0x2f8   : > { %p990_p12 = scmp.lt.u32.totalorder %s988_s12, %s984_s27  ;;  %p992_p2 = scmp.lt.u32.totalorder %s984_s27, %s1369_s29 }
 0x2f9   : > { %p986_p6 = pnand %p985_p3, %p1469_p13 }
 0x2fa   : > { %p991_p1 = por %p990_p12, %p989_p8 }
 0x2fb   : > { %p987_p9 = pneg %p986_p6 }
 0x2fc   : > { %p993_p11 = por %p992_p2, %p991_p1 }
 0x2fe   : > { %p994_p0 = pnand %p993_p11, %p987_p9 }
 0x300   : > { %997 = shalt.err (!%p994_p0)
}
 0x301   : > { %s1070_s24 = smov 128   ;;  %s1071_s9 = smov 8  }
 0x302   : > { %765 = dma.vmem_to_hbm [thread:$0]  (%p1469_p13), %s1371_s10, 256, %s1369_s29, %s533_s30, %s1070_s24, %s1070_s24, %s1071_s9  }
 0x303 PF: > { %s563_s23 = sand.u32 1, %s1040_s15   ;;  %p1470_p5 = scmp.ne.s32.totalorder %s1455_s8, 0 }
 0x304   : > { %p1471_p10 = scmp.ge.s32.totalorder %s1060_s20, 2  ;;  %s564_s19 = scalar_lea.sflag [#allocation4], %s563_s23 }
 0x306   : > { %p782_p7 = pnand %p1471_p10, %p1470_p5 }
 0x308   : > { %1035 = dma.done.wait (!%p782_p7), %s564_s19, 256  }
 0x309   : > { %1037 = vsyncadd (!%p782_p7), %s564_s19, 4294967040  ;;  %s24_s20 = sadd.s32 1, %s1060_s20   ;;  %s1472_s21 = sld [smem:[#allocation15_spill]] }
 0x30a   : > { %p21_p4 = scmp.ge.s32.totalorder %s24_s20, 4   ;;  %s1473_s17 = sld [smem:[#allocation18_spill]] }
 0x30b   : > { %s1474_s18 = sld [smem:[#allocation16_spill]]  ;;  %s1475_s19 = sld [smem:[#allocation17_spill]] }
 0x30c   : > { %s1476_s15 = smov %s1044_s16  ;;  %23 = sbr.rel (!%p21_p4) target bundleno = 12 (0xc), region = 109 }
 0x30f   : > { %s1477_s16 = smov %s1472_s21 }
 0x313   :  { %569 = vsyncpa [#allocation3], 1 }
 0x314   :  { %571 = vsyncpa [#allocation3 + $0x1], 1 }
 0x315   :  { %572 = vsyncpa [#allocation6], 1 }
 0x316   :  { %574 = vsyncpa [#allocation6 + $0x1], 1 }
 0x317   :  { %575 = vsyncpa [#allocation9], 1 }
 0x318   :  { %576 = vsyncpa [#allocation4], 1 }
 0x319   :  { %578 = vsyncpa [#allocation4 + $0x1], 1 }

</bundles_post_ra>
